<compile_context>
chip_gen: v7x
topology: tpu7x:2x2x1
jax: 0.10.0
libtpu: 0.0.40
codegen_flags: <defaults>
</compile_context>

<pallas_src>
import jax
import jax.numpy as jnp
from jax.experimental import pallas as pl
from jax.experimental.pallas import tpu as pltpu

EPS = 1e-5
LANES = 128
# (in, out) per linear layer, mirroring the PyTorch module
LAYER_DIMS = [(2, 32), (32, 64), (64, 128), (128, 64), (64, 32), (32, 1)]

# Packed slab layout (each row zero-padded to 128 lanes):
#   rows  0..18 : small per-feature params
#     0: w1[0,:]  1: w1[1,:]  2: b1  3: g1  4: bt1
#     5: b2  6: g2  7: bt2
#     8: b3  9: g3 10: bt3
#    11: b4 12: g4 13: bt4
#    14: b5 15: g5 16: bt5
#    17: w6^T (32)            18: b6 replicated across all 128 lanes
#   rows 19..23 : zero padding (sublane alignment)
#   rows  24..151 : w2 zero-padded to (128, 128)
#   rows 152..279 : w3 zero-padded to (128, 128)
#   rows 280..407 : w4 zero-padded to (128, 128)
#   rows 408..535 : w5 zero-padded to (128, 128)
SMALL_ROWS = 24
R_W2 = SMALL_ROWS
R_W3 = R_W2 + LANES
R_W4 = R_W3 + LANES
R_W5 = R_W4 + LANES
SLAB_ROWS = R_W5 + LANES  # 536


def mlp_kernel(x_ref, p_ref, out_ref):
    x = x_ref[...].astype(jnp.float32)
    rows = p_ref[0:SMALL_ROWS, :]
    inv_n = 1.0 / x.shape[0]

    def bn_tanh(pre, g, bt):
        """tanh then training-mode BatchNorm, fused into one scale/shift FMA.

        Zero-padded lanes stay exactly zero: pre=0 -> h=0, sums=0 -> var=0,
        s = g(=0)*rsqrt(eps) = 0, t = 0, so h*s + t = 0.
        """
        h = jnp.tanh(pre)
        s1 = jnp.sum(h, axis=0, keepdims=True)
        s2 = jnp.sum(h * h, axis=0, keepdims=True)   # independent reduce, co-issues
        mu = s1 * inv_n
        var = s2 * inv_n - mu * mu                   # biased batch variance, one pass
        s = g * jax.lax.rsqrt(var + EPS)
        t = bt - mu * s
        return h * s + t

    # layer 0 (2 -> 32, lane-padded to 128): K=2 matmul as two broadcast FMAs (no MXU)
    h = (x[:, 0:1] * rows[0:1, :]
         + x[:, 1:2] * rows[1:2, :]
         + rows[2:3, :])
    h = bn_tanh(h, rows[3:4, :], rows[4:5, :])

    # layer 1 (32 -> 64), K and N zero-padded to 128: single MXU pass
    h = jnp.dot(h, p_ref[R_W2:R_W2 + LANES, :],
                preferred_element_type=jnp.float32) + rows[5:6, :]
    h = bn_tanh(h, rows[6:7, :], rows[7:8, :])

    # layer 2 (64 -> 128)
    h = jnp.dot(h, p_ref[R_W3:R_W3 + LANES, :],
                preferred_element_type=jnp.float32) + rows[8:9, :]
    h = bn_tanh(h, rows[9:10, :], rows[10:11, :])

    # layer 3 (128 -> 64)
    h = jnp.dot(h, p_ref[R_W4:R_W4 + LANES, :],
                preferred_element_type=jnp.float32) + rows[11:12, :]
    h = bn_tanh(h, rows[12:13, :], rows[13:14, :])

    # layer 4 (64 -> 32)
    h = jnp.dot(h, p_ref[R_W5:R_W5 + LANES, :],
                preferred_element_type=jnp.float32) + rows[14:15, :]
    h = bn_tanh(h, rows[15:16, :], rows[16:17, :])

    # output layer (32 -> 1): lane reduction (no MXU); b6 row is replicated
    # across all 128 lanes, so the store is a full lane-dense (8, 128) slab.
    out_ref[...] = (jnp.sum(h * rows[17:18, :], axis=-1, keepdims=True)
                    + rows[18:19, :])


def _pad_row(v):
    v = jnp.asarray(v, jnp.float32).reshape(1, -1)
    return jnp.pad(v, ((0, 0), (0, LANES - v.shape[1])))


def _pad_tile(w):
    w = jnp.asarray(w, jnp.float32)
    return jnp.pad(w, ((0, LANES - w.shape[0]), (0, LANES - w.shape[1])))


def pack_params(params):
    """Pack ALL parameters into one (536, 128) f32 slab. Call ONCE at init
    (outside the jitted forward) -- this is intentionally not jitted per call."""
    (w1, b1, g1, bt1,
     w2, b2, g2, bt2,
     w3, b3, g3, bt3,
     w4, b4, g4, bt4,
     w5, b5, g5, bt5,
     w6, b6) = params
    b6_row = jnp.broadcast_to(jnp.asarray(b6, jnp.float32).reshape(1, 1), (1, LANES))
    small = [w1[0:1, :], w1[1:2, :], b1, g1, bt1,
             b2, g2, bt2,
             b3, g3, bt3,
             b4, g4, bt4,
             b5, g5, bt5,
             w6.T, b6_row]
    small_block = jnp.concatenate([_pad_row(r) for r in small], axis=0)
    small_block = jnp.pad(small_block, ((0, SMALL_ROWS - small_block.shape[0]), (0, 0)))
    slab = jnp.concatenate(
        [small_block, _pad_tile(w2), _pad_tile(w3), _pad_tile(w4), _pad_tile(w5)],
        axis=0)
    assert slab.shape == (SLAB_ROWS, LANES), slab.shape
    return slab


def init_params(key):
    """PyTorch-style init: Linear (uniform +-1/sqrt(fan_in)), BN gamma=1, beta=0."""
    params = []
    for li, (fan_in, fan_out) in enumerate(LAYER_DIMS):
        key, kw, kb = jax.random.split(key, 3)
        bound = 1.0 / jnp.sqrt(fan_in)
        w = jax.random.uniform(kw, (fan_in, fan_out), jnp.float32, -bound, bound)
        b = jax.random.uniform(kb, (1, fan_out), jnp.float32, -bound, bound)
        params.append(w)
        params.append(b)
        if li < 5:  # batchnorm params for the 5 hidden activations
            params.append(jnp.ones((1, fan_out), jnp.float32))   # gamma
            params.append(jnp.zeros((1, fan_out), jnp.float32))  # beta
    return params


@jax.jit
def cross_validation_forward(x, slab):
    """x: (batch, 2) f32.  slab: pre-packed (536, 128) f32 parameter slab."""
    batch = x.shape[0]
    vmem = pl.BlockSpec(memory_space=pltpu.MemorySpace.VMEM)
    out = pl.pallas_call(
        mlp_kernel,
        out_shape=jax.ShapeDtypeStruct((batch, LANES), jnp.float32),
        in_specs=[vmem, vmem],
        out_specs=vmem,
        cost_estimate=pl.CostEstimate(
            flops=1_110_000,
            transcendentals=5 * batch * LANES,
            bytes_accessed=x.size * 4 + SLAB_ROWS * LANES * 4 + batch * LANES * 4),
    )(x, slab)
    return out[:, :1]   # lane-dense kernel output, slice to the true (batch, 1)


def reference_forward(x, params):
    """Pure-JAX reference with the same training-mode BN semantics."""
    h = x
    p = list(params)
    for li in range(6):
        w, b = p.pop(0), p.pop(0)
        h = jnp.dot(h, w, precision=jax.lax.Precision.HIGHEST) + b
        if li < 5:
            g, bt = p.pop(0), p.pop(0)
            h = jnp.tanh(h)
            mu = jnp.mean(h, axis=0, keepdims=True)
            var = jnp.mean((h - mu) ** 2, axis=0, keepdims=True)
            h = (h - mu) * jax.lax.rsqrt(var + EPS) * g + bt
    return h


if __name__ == "__main__":
    key = jax.random.PRNGKey(0)
    key, kx, kp = jax.random.split(key, 3)
    batch, input_size = 8, 2
    x = jax.random.normal(kx, (batch, input_size), jnp.float32)
    params = init_params(kp)

    # Pack once, outside the jitted forward (no per-call pad/concat/transpose).
    slab = jax.block_until_ready(pack_params(params))

    out = cross_validation_forward(x, slab)
    jax.block_until_ready(out)
    assert out.shape == (batch, 1), out.shape
    assert jnp.all(jnp.isfinite(out))

    ref = reference_forward(x, params)
    assert jnp.allclose(out, ref, atol=1e-3, rtol=1e-3), float(jnp.max(jnp.abs(out - ref)))
    print("KERNEL_OK")
</pallas_src>

<mosaic_0001>
module attributes {stable_mosaic.version = 11 : i64} {
  func.func @mlp_kernel(%arg0: memref<8x2xf32, #tpu.memory_space<vmem>>, %arg1: memref<536x128xf32, #tpu.memory_space<vmem>>, %arg2: memref<8x128xf32, #tpu.memory_space<vmem>>) attributes {dimension_semantics = [], scalar_prefetch = 0 : i64, scratch_operands = 0 : i64, tpu.core_type = #tpu.core_type<tc>} {
    %c0 = arith.constant 0 : index
    %c0_0 = arith.constant 0 : index
    %0 = vector.load %arg0[%c0, %c0_0] : memref<8x2xf32, #tpu.memory_space<vmem>>, vector<8x2xf32>
    %c0_1 = arith.constant 0 : index
    %c0_2 = arith.constant 0 : index
    %1 = vector.load %arg1[%c0_1, %c0_2] : memref<536x128xf32, #tpu.memory_space<vmem>>, vector<24x128xf32>
    %2 = vector.extract_strided_slice %0 {offsets = [0, 0], sizes = [8, 1], strides = [1, 1]} : vector<8x2xf32> to vector<8x1xf32>
    %3 = vector.extract_strided_slice %1 {offsets = [0, 0], sizes = [1, 128], strides = [1, 1]} : vector<24x128xf32> to vector<1x128xf32>
    %4 = vector.broadcast %2 : vector<8x1xf32> to vector<8x128xf32>
    %5 = vector.broadcast %3 : vector<1x128xf32> to vector<8x128xf32>
    %6 = arith.mulf %4, %5 : vector<8x128xf32>
    %7 = vector.extract_strided_slice %0 {offsets = [0, 1], sizes = [8, 1], strides = [1, 1]} : vector<8x2xf32> to vector<8x1xf32>
    %8 = vector.extract_strided_slice %1 {offsets = [1, 0], sizes = [1, 128], strides = [1, 1]} : vector<24x128xf32> to vector<1x128xf32>
    %9 = vector.broadcast %7 : vector<8x1xf32> to vector<8x128xf32>
    %10 = vector.broadcast %8 : vector<1x128xf32> to vector<8x128xf32>
    %11 = arith.mulf %9, %10 : vector<8x128xf32>
    %12 = arith.addf %6, %11 : vector<8x128xf32>
    %13 = vector.extract_strided_slice %1 {offsets = [2, 0], sizes = [1, 128], strides = [1, 1]} : vector<24x128xf32> to vector<1x128xf32>
    %14 = vector.broadcast %13 : vector<1x128xf32> to vector<8x128xf32>
    %15 = arith.addf %12, %14 : vector<8x128xf32>
    %16 = vector.extract_strided_slice %1 {offsets = [3, 0], sizes = [1, 128], strides = [1, 1]} : vector<24x128xf32> to vector<1x128xf32>
    %17 = vector.extract_strided_slice %1 {offsets = [4, 0], sizes = [1, 128], strides = [1, 1]} : vector<24x128xf32> to vector<1x128xf32>
    %18 = math.tanh %15 : vector<8x128xf32>
    %cst = arith.constant dense<0.000000e+00> : vector<128xf32>
    %19 = vector.multi_reduction <add>, %18, %cst [0] : vector<8x128xf32> to vector<128xf32>
    %20 = vector.shape_cast %19 : vector<128xf32> to vector<1x128xf32>
    %21 = arith.mulf %18, %18 : vector<8x128xf32>
    %cst_3 = arith.constant dense<0.000000e+00> : vector<128xf32>
    %22 = vector.multi_reduction <add>, %21, %cst_3 [0] : vector<8x128xf32> to vector<128xf32>
    %23 = vector.shape_cast %22 : vector<128xf32> to vector<1x128xf32>
    %cst_4 = arith.constant 1.250000e-01 : f32
    %24 = vector.broadcast %cst_4 : f32 to vector<1x128xf32>
    %25 = arith.mulf %20, %24 : vector<1x128xf32>
    %cst_5 = arith.constant 1.250000e-01 : f32
    %26 = vector.broadcast %cst_5 : f32 to vector<1x128xf32>
    %27 = arith.mulf %23, %26 : vector<1x128xf32>
    %28 = arith.mulf %25, %25 : vector<1x128xf32>
    %29 = arith.subf %27, %28 : vector<1x128xf32>
    %cst_6 = arith.constant 9.99999974E-6 : f32
    %30 = vector.broadcast %cst_6 : f32 to vector<1x128xf32>
    %31 = arith.addf %29, %30 : vector<1x128xf32>
    %32 = math.rsqrt %31 : vector<1x128xf32>
    %33 = arith.mulf %16, %32 : vector<1x128xf32>
    %34 = arith.mulf %25, %33 : vector<1x128xf32>
    %35 = arith.subf %17, %34 : vector<1x128xf32>
    %36 = vector.broadcast %33 : vector<1x128xf32> to vector<8x128xf32>
    %37 = arith.mulf %18, %36 : vector<8x128xf32>
    %38 = vector.broadcast %35 : vector<1x128xf32> to vector<8x128xf32>
    %39 = arith.addf %37, %38 : vector<8x128xf32>
    %c24 = arith.constant 24 : index
    %c0_7 = arith.constant 0 : index
    %40 = vector.load %arg1[%c24, %c0_7] : memref<536x128xf32, #tpu.memory_space<vmem>>, vector<128x128xf32>
    %cst_8 = arith.constant dense<0.000000e+00> : vector<8x128xf32>
    %41 = tpu.matmul %39, %40, %cst_8 {dimension_numbers = #tpu.dot_dimension_numbers<[1], [0], [0], [1], [0, 0, 1, 1], [], []>} : vector<8x128xf32>, vector<128x128xf32>, vector<8x128xf32> -> vector<8x128xf32>
    %42 = vector.extract_strided_slice %1 {offsets = [5, 0], sizes = [1, 128], strides = [1, 1]} : vector<24x128xf32> to vector<1x128xf32>
    %43 = vector.broadcast %42 : vector<1x128xf32> to vector<8x128xf32>
    %44 = arith.addf %41, %43 : vector<8x128xf32>
    %45 = vector.extract_strided_slice %1 {offsets = [6, 0], sizes = [1, 128], strides = [1, 1]} : vector<24x128xf32> to vector<1x128xf32>
    %46 = vector.extract_strided_slice %1 {offsets = [7, 0], sizes = [1, 128], strides = [1, 1]} : vector<24x128xf32> to vector<1x128xf32>
    %47 = math.tanh %44 : vector<8x128xf32>
    %cst_9 = arith.constant dense<0.000000e+00> : vector<128xf32>
    %48 = vector.multi_reduction <add>, %47, %cst_9 [0] : vector<8x128xf32> to vector<128xf32>
    %49 = vector.shape_cast %48 : vector<128xf32> to vector<1x128xf32>
    %50 = arith.mulf %47, %47 : vector<8x128xf32>
    %cst_10 = arith.constant dense<0.000000e+00> : vector<128xf32>
    %51 = vector.multi_reduction <add>, %50, %cst_10 [0] : vector<8x128xf32> to vector<128xf32>
    %52 = vector.shape_cast %51 : vector<128xf32> to vector<1x128xf32>
    %cst_11 = arith.constant 1.250000e-01 : f32
    %53 = vector.broadcast %cst_11 : f32 to vector<1x128xf32>
    %54 = arith.mulf %49, %53 : vector<1x128xf32>
    %cst_12 = arith.constant 1.250000e-01 : f32
    %55 = vector.broadcast %cst_12 : f32 to vector<1x128xf32>
    %56 = arith.mulf %52, %55 : vector<1x128xf32>
    %57 = arith.mulf %54, %54 : vector<1x128xf32>
    %58 = arith.subf %56, %57 : vector<1x128xf32>
    %cst_13 = arith.constant 9.99999974E-6 : f32
    %59 = vector.broadcast %cst_13 : f32 to vector<1x128xf32>
    %60 = arith.addf %58, %59 : vector<1x128xf32>
    %61 = math.rsqrt %60 : vector<1x128xf32>
    %62 = arith.mulf %45, %61 : vector<1x128xf32>
    %63 = arith.mulf %54, %62 : vector<1x128xf32>
    %64 = arith.subf %46, %63 : vector<1x128xf32>
    %65 = vector.broadcast %62 : vector<1x128xf32> to vector<8x128xf32>
    %66 = arith.mulf %47, %65 : vector<8x128xf32>
    %67 = vector.broadcast %64 : vector<1x128xf32> to vector<8x128xf32>
    %68 = arith.addf %66, %67 : vector<8x128xf32>
    %c152 = arith.constant 152 : index
    %c0_14 = arith.constant 0 : index
    %69 = vector.load %arg1[%c152, %c0_14] : memref<536x128xf32, #tpu.memory_space<vmem>>, vector<128x128xf32>
    %cst_15 = arith.constant dense<0.000000e+00> : vector<8x128xf32>
    %70 = tpu.matmul %68, %69, %cst_15 {dimension_numbers = #tpu.dot_dimension_numbers<[1], [0], [0], [1], [0, 0, 1, 1], [], []>} : vector<8x128xf32>, vector<128x128xf32>, vector<8x128xf32> -> vector<8x128xf32>
    %71 = vector.extract_strided_slice %1 {offsets = [8, 0], sizes = [1, 128], strides = [1, 1]} : vector<24x128xf32> to vector<1x128xf32>
    %72 = vector.broadcast %71 : vector<1x128xf32> to vector<8x128xf32>
    %73 = arith.addf %70, %72 : vector<8x128xf32>
    %74 = vector.extract_strided_slice %1 {offsets = [9, 0], sizes = [1, 128], strides = [1, 1]} : vector<24x128xf32> to vector<1x128xf32>
    %75 = vector.extract_strided_slice %1 {offsets = [10, 0], sizes = [1, 128], strides = [1, 1]} : vector<24x128xf32> to vector<1x128xf32>
    %76 = math.tanh %73 : vector<8x128xf32>
    %cst_16 = arith.constant dense<0.000000e+00> : vector<128xf32>
    %77 = vector.multi_reduction <add>, %76, %cst_16 [0] : vector<8x128xf32> to vector<128xf32>
    %78 = vector.shape_cast %77 : vector<128xf32> to vector<1x128xf32>
    %79 = arith.mulf %76, %76 : vector<8x128xf32>
    %cst_17 = arith.constant dense<0.000000e+00> : vector<128xf32>
    %80 = vector.multi_reduction <add>, %79, %cst_17 [0] : vector<8x128xf32> to vector<128xf32>
    %81 = vector.shape_cast %80 : vector<128xf32> to vector<1x128xf32>
    %cst_18 = arith.constant 1.250000e-01 : f32
    %82 = vector.broadcast %cst_18 : f32 to vector<1x128xf32>
    %83 = arith.mulf %78, %82 : vector<1x128xf32>
    %cst_19 = arith.constant 1.250000e-01 : f32
    %84 = vector.broadcast %cst_19 : f32 to vector<1x128xf32>
    %85 = arith.mulf %81, %84 : vector<1x128xf32>
    %86 = arith.mulf %83, %83 : vector<1x128xf32>
    %87 = arith.subf %85, %86 : vector<1x128xf32>
    %cst_20 = arith.constant 9.99999974E-6 : f32
    %88 = vector.broadcast %cst_20 : f32 to vector<1x128xf32>
    %89 = arith.addf %87, %88 : vector<1x128xf32>
    %90 = math.rsqrt %89 : vector<1x128xf32>
    %91 = arith.mulf %74, %90 : vector<1x128xf32>
    %92 = arith.mulf %83, %91 : vector<1x128xf32>
    %93 = arith.subf %75, %92 : vector<1x128xf32>
    %94 = vector.broadcast %91 : vector<1x128xf32> to vector<8x128xf32>
    %95 = arith.mulf %76, %94 : vector<8x128xf32>
    %96 = vector.broadcast %93 : vector<1x128xf32> to vector<8x128xf32>
    %97 = arith.addf %95, %96 : vector<8x128xf32>
    %c280 = arith.constant 280 : index
    %c0_21 = arith.constant 0 : index
    %98 = vector.load %arg1[%c280, %c0_21] : memref<536x128xf32, #tpu.memory_space<vmem>>, vector<128x128xf32>
    %cst_22 = arith.constant dense<0.000000e+00> : vector<8x128xf32>
    %99 = tpu.matmul %97, %98, %cst_22 {dimension_numbers = #tpu.dot_dimension_numbers<[1], [0], [0], [1], [0, 0, 1, 1], [], []>} : vector<8x128xf32>, vector<128x128xf32>, vector<8x128xf32> -> vector<8x128xf32>
    %100 = vector.extract_strided_slice %1 {offsets = [11, 0], sizes = [1, 128], strides = [1, 1]} : vector<24x128xf32> to vector<1x128xf32>
    %101 = vector.broadcast %100 : vector<1x128xf32> to vector<8x128xf32>
    %102 = arith.addf %99, %101 : vector<8x128xf32>
    %103 = vector.extract_strided_slice %1 {offsets = [12, 0], sizes = [1, 128], strides = [1, 1]} : vector<24x128xf32> to vector<1x128xf32>
    %104 = vector.extract_strided_slice %1 {offsets = [13, 0], sizes = [1, 128], strides = [1, 1]} : vector<24x128xf32> to vector<1x128xf32>
    %105 = math.tanh %102 : vector<8x128xf32>
    %cst_23 = arith.constant dense<0.000000e+00> : vector<128xf32>
    %106 = vector.multi_reduction <add>, %105, %cst_23 [0] : vector<8x128xf32> to vector<128xf32>
    %107 = vector.shape_cast %106 : vector<128xf32> to vector<1x128xf32>
    %108 = arith.mulf %105, %105 : vector<8x128xf32>
    %cst_24 = arith.constant dense<0.000000e+00> : vector<128xf32>
    %109 = vector.multi_reduction <add>, %108, %cst_24 [0] : vector<8x128xf32> to vector<128xf32>
    %110 = vector.shape_cast %109 : vector<128xf32> to vector<1x128xf32>
    %cst_25 = arith.constant 1.250000e-01 : f32
    %111 = vector.broadcast %cst_25 : f32 to vector<1x128xf32>
    %112 = arith.mulf %107, %111 : vector<1x128xf32>
    %cst_26 = arith.constant 1.250000e-01 : f32
    %113 = vector.broadcast %cst_26 : f32 to vector<1x128xf32>
    %114 = arith.mulf %110, %113 : vector<1x128xf32>
    %115 = arith.mulf %112, %112 : vector<1x128xf32>
    %116 = arith.subf %114, %115 : vector<1x128xf32>
    %cst_27 = arith.constant 9.99999974E-6 : f32
    %117 = vector.broadcast %cst_27 : f32 to vector<1x128xf32>
    %118 = arith.addf %116, %117 : vector<1x128xf32>
    %119 = math.rsqrt %118 : vector<1x128xf32>
    %120 = arith.mulf %103, %119 : vector<1x128xf32>
    %121 = arith.mulf %112, %120 : vector<1x128xf32>
    %122 = arith.subf %104, %121 : vector<1x128xf32>
    %123 = vector.broadcast %120 : vector<1x128xf32> to vector<8x128xf32>
    %124 = arith.mulf %105, %123 : vector<8x128xf32>
    %125 = vector.broadcast %122 : vector<1x128xf32> to vector<8x128xf32>
    %126 = arith.addf %124, %125 : vector<8x128xf32>
    %c408 = arith.constant 408 : index
    %c0_28 = arith.constant 0 : index
    %127 = vector.load %arg1[%c408, %c0_28] : memref<536x128xf32, #tpu.memory_space<vmem>>, vector<128x128xf32>
    %cst_29 = arith.constant dense<0.000000e+00> : vector<8x128xf32>
    %128 = tpu.matmul %126, %127, %cst_29 {dimension_numbers = #tpu.dot_dimension_numbers<[1], [0], [0], [1], [0, 0, 1, 1], [], []>} : vector<8x128xf32>, vector<128x128xf32>, vector<8x128xf32> -> vector<8x128xf32>
    %129 = vector.extract_strided_slice %1 {offsets = [14, 0], sizes = [1, 128], strides = [1, 1]} : vector<24x128xf32> to vector<1x128xf32>
    %130 = vector.broadcast %129 : vector<1x128xf32> to vector<8x128xf32>
    %131 = arith.addf %128, %130 : vector<8x128xf32>
    %132 = vector.extract_strided_slice %1 {offsets = [15, 0], sizes = [1, 128], strides = [1, 1]} : vector<24x128xf32> to vector<1x128xf32>
    %133 = vector.extract_strided_slice %1 {offsets = [16, 0], sizes = [1, 128], strides = [1, 1]} : vector<24x128xf32> to vector<1x128xf32>
    %134 = math.tanh %131 : vector<8x128xf32>
    %cst_30 = arith.constant dense<0.000000e+00> : vector<128xf32>
    %135 = vector.multi_reduction <add>, %134, %cst_30 [0] : vector<8x128xf32> to vector<128xf32>
    %136 = vector.shape_cast %135 : vector<128xf32> to vector<1x128xf32>
    %137 = arith.mulf %134, %134 : vector<8x128xf32>
    %cst_31 = arith.constant dense<0.000000e+00> : vector<128xf32>
    %138 = vector.multi_reduction <add>, %137, %cst_31 [0] : vector<8x128xf32> to vector<128xf32>
    %139 = vector.shape_cast %138 : vector<128xf32> to vector<1x128xf32>
    %cst_32 = arith.constant 1.250000e-01 : f32
    %140 = vector.broadcast %cst_32 : f32 to vector<1x128xf32>
    %141 = arith.mulf %136, %140 : vector<1x128xf32>
    %cst_33 = arith.constant 1.250000e-01 : f32
    %142 = vector.broadcast %cst_33 : f32 to vector<1x128xf32>
    %143 = arith.mulf %139, %142 : vector<1x128xf32>
    %144 = arith.mulf %141, %141 : vector<1x128xf32>
    %145 = arith.subf %143, %144 : vector<1x128xf32>
    %cst_34 = arith.constant 9.99999974E-6 : f32
    %146 = vector.broadcast %cst_34 : f32 to vector<1x128xf32>
    %147 = arith.addf %145, %146 : vector<1x128xf32>
    %148 = math.rsqrt %147 : vector<1x128xf32>
    %149 = arith.mulf %132, %148 : vector<1x128xf32>
    %150 = arith.mulf %141, %149 : vector<1x128xf32>
    %151 = arith.subf %133, %150 : vector<1x128xf32>
    %152 = vector.broadcast %149 : vector<1x128xf32> to vector<8x128xf32>
    %153 = arith.mulf %134, %152 : vector<8x128xf32>
    %154 = vector.broadcast %151 : vector<1x128xf32> to vector<8x128xf32>
    %155 = arith.addf %153, %154 : vector<8x128xf32>
    %156 = vector.extract_strided_slice %1 {offsets = [17, 0], sizes = [1, 128], strides = [1, 1]} : vector<24x128xf32> to vector<1x128xf32>
    %157 = vector.broadcast %156 : vector<1x128xf32> to vector<8x128xf32>
    %158 = arith.mulf %155, %157 : vector<8x128xf32>
    %cst_35 = arith.constant dense<0.000000e+00> : vector<8xf32>
    %159 = vector.multi_reduction <add>, %158, %cst_35 [1] : vector<8x128xf32> to vector<8xf32>
    %160 = vector.shape_cast %159 : vector<8xf32> to vector<8x1xf32>
    %161 = vector.extract_strided_slice %1 {offsets = [18, 0], sizes = [1, 128], strides = [1, 1]} : vector<24x128xf32> to vector<1x128xf32>
    %162 = vector.broadcast %160 : vector<8x1xf32> to vector<8x128xf32>
    %163 = vector.broadcast %161 : vector<1x128xf32> to vector<8x128xf32>
    %164 = arith.addf %162, %163 : vector<8x128xf32>
    %c0_36 = arith.constant 0 : index
    %c0_37 = arith.constant 0 : index
    %165 = vector.load %arg2[%c0_36, %c0_37] : memref<8x128xf32, #tpu.memory_space<vmem>>, vector<8x128xf32>
    tpu.vector_store %arg2[%c0_36, %c0_37], %164 {strides = array<i32>} : memref<8x128xf32, #tpu.memory_space<vmem>>, vector<8x128xf32>,
    return
  }
}

</mosaic_0001>

<bundles_post_ra>
// kernel: cross_validation_forward.1
= control target key start
LH: loop header
LB: loop body
LE: loop exit
PB: predicated region body
PF: predicated region fallthrough
CT: control target
= control target key end

     0   :  { %7 = vsyncpa [#allocation3], 0  ;;  %s970_s9 = smov [#allocation2]   ;;  %s1116_s0 = inlined_call_operand.vmem [shape: f32[8,2], index: 0, kind: input, shape index: {}]   ;;  %s1117_s1 = inlined_call_operand.hbm [shape: f32[536,128], index: 1, kind: input, shape index: {}]   ;;  %s1118_s2 = inlined_call_operand.vmem [shape: f32[8,128], index: 2, kind: output, shape index: {}]  }
   0x1   :  { %s15_s10 = sshll.u32 %s970_s9, 4  ;;  %s946_s13 = scalar_lea.hbm %s1117_s1, 8576  ;;  %s16_s10 = int_to_ptr.vmem [resolvable:$true] %s15_s10 }
   0x2   :  { %p947_p0 = scmp.ne.s32.totalorder %s1117_s1, %s946_s13  ;;  %p950_p1 = scmp.lt.u32.totalorder %s946_s13, %s1117_s1 }
   0x4   :  { %p952_p2 = pnand %p950_p1, %p947_p0 }
   0x6   :  { %955 = shalt.err (!%p952_p2)
}
   0x7   :  { %s956_s18 = scalar_lea.vmem %s16_s10, 8576  ;;  %p961_p4 = scmp.lt.s32.totalorder %s16_s10, %s16_s10 }
   0x8   :  { %p957_p3 = scmp.ne.s32.totalorder %s16_s10, %s956_s18  ;;  %p962_p5 = scmp.lt.s32.totalorder %s956_s18, %s956_s18 }
   0xa   :  { %p963_p6 = por %p962_p5, %p961_p4 }
   0xc   :  { %p964_p7 = pnand %p963_p6, %p957_p3 }
   0xe   :  { %967 = shalt.err (!%p964_p7)
}
   0xf   :  { %s971_s19 = smov 128   ;;  %s972_s20 = smov 8  }
  0x10   :  { %21 = dma.hbm_to_vmem [thread:$0]  %s1117_s1, 8576, %s16_s10, [#allocation3], %s971_s19, %s971_s19, %s972_s20  }
  0x11   :  { %968 = dma.done.wait [#allocation3], 8576  }
  0x12   :  { %969 = vsyncadd [#allocation3], 4294958720  ;;  %v973_v0 = vmov 0   ;;  %v25_v1 = vld [vmem:[%s1116_s0] sm:$0xff]  ;;  %v974_v2 = vmov 1   ;;  %v90_v3 = vld [vmem:[#allocation2 + $0x18] sm:$0xff]  ;;  %v34_v29 = vlaneseq }
  0x13   :  { %924 = vset.pattern.permute.xlu0 %v973_v0  ;;  %v91_v4 = vld [vmem:[#allocation2 + $0x20] sm:$0xff]  ;;  %v92_v5 = vld [vmem:[#allocation2 + $0x28] sm:$0xff]  ;;  %v975_v6 = vmov 0.0|0.0   ;;  %v93_v8 = vld [vmem:[#allocation2 + $0x30] sm:$0xff]  ;;  %vm976_vm0 = vmmov 0   ;;  %v977_v9 = vmov 0.0  }
  0x14   :  { %31 = vperm.xlu0 %924, %v25_v1   ;;  %820 = vmatprep.subr.bf16.mxu0 %v975_v6  ;;  %v821_v7 = vpack.c.bf16 %v91_v4, %v90_v3  ;;  %v824_v10 = vpack.c.bf16 %v93_v8, %v92_v5  ;;  %v94_v11 = vld [vmem:[#allocation2 + $0x38] sm:$0xff]  ;;  %v95_v12 = vld [vmem:[#allocation2 + $0x40] sm:$0xff]  ;;  %v96_v14 = vld [vmem:[#allocation2 + $0x48] sm:$0xff]  ;;  %v1022_v30 = vshrl.u32 %v34_v29, 7 }
  0x15   :  { %712 = vmatprep.mubr.msk.f32.mxu0 %vm976_vm0, %v977_v9  ;;  %844 = vmatprep.subr.bf16.mxu1 %v975_v6  ;;  %v827_v13 = vpack.c.bf16 %v95_v12, %v94_v11  ;;  %v97_v15 = vld [vmem:[#allocation2 + $0x50] sm:$0xff]  ;;  %v98_v17 = vld [vmem:[#allocation2 + $0x58] sm:$0xff]  ;;  %v99_v18 = vld [vmem:[#allocation2 + $0x60] sm:$0xff] }
  0x16   :  { %747 = vmatprep.mubr.msk.f32.mxu1 %vm976_vm0, %v977_v9  ;;  %822 = vmatpush3.bf16.msra.mxu0 %v821_v7  ;;  %v830_v16 = vpack.c.bf16 %v97_v15, %v96_v14  ;;  %v833_v19 = vpack.c.bf16 %v99_v18, %v98_v17  ;;  %v100_v20 = vld [vmem:[#allocation2 + $0x68] sm:$0xff]  ;;  %v101_v21 = vld [vmem:[#allocation2 + $0x70] sm:$0xff]  ;;  %v102_v23 = vld [vmem:[#allocation2 + $0x78] sm:$0xff]  ;;  %v1025_v31 = vsub.s32 0, %v1022_v30  ;;  %v1028_v32 = vsub.s32 1, %v1022_v30 }
  0x17   :  { %823 = vmatprep.subr.bf16.mxu0 %v975_v6  ;;  %v836_v22 = vpack.c.bf16 %v101_v21, %v100_v20  ;;  %v103_v24 = vld [vmem:[#allocation2 + $0x80] sm:$0xff]  ;;  %v104_v26 = vld [vmem:[#allocation2 + $0x88] sm:$0xff]  ;;  %v105_v27 = vld [vmem:[#allocation2 + $0x90] sm:$0xff]  ;;  %v1037_v37 = vsub.s32 2, %v1022_v30  ;;  %v87_v5 = vsub.s32 4, %v1022_v30 }
  0x18   :  { %925 = vset.pattern.permute.xlu0 %v974_v2  ;;  %v839_v25 = vpack.c.bf16 %v103_v24, %v102_v23  ;;  %v842_v28 = vpack.c.bf16 %v105_v27, %v104_v26  ;;  %v1030_v33 = vld [vmem:[#allocation2] sm:$0xff]  ;;  %v216_v12 = vld [vmem:[#allocation2 + $0x98] sm:$0xff]  ;;  %v218_v14 = vld [vmem:[#allocation2 + $0xa8] sm:$0xff] }
  0x19   :  { %40 = vperm.xlu0 %925, %v25_v1   ;;  %v37_v35 = vrot.slane %v1030_v33, %v1025_v31  ;;  %v46_v36 = vrot.slane %v1030_v33, %v1028_v32  ;;  %v52_v40 = vrot.slane %v1030_v33, %v1037_v37  ;;  %v82_v1 = vsub.s32 3, %v1022_v30  ;;  %v220_v18 = vld [vmem:[#allocation2 + $0xb8] sm:$0xff]  ;;  %v222_v21 = vld [vmem:[#allocation2 + $0xc8] sm:$0xff] }
  0x1a   :  { %825 = vmatpush3.bf16.msra.mxu0 %v824_v10  ;;  %v224_v24 = vld [vmem:[#allocation2 + $0xd8] sm:$0xff]  ;;  %v226_v27 = vld [vmem:[#allocation2 + $0xe8] sm:$0xff] }
  0x1b   :  { %826 = vmatprep.subr.bf16.mxu0 %v975_v6 }
  0x1e   :  { %828 = vmatpush3.bf16.msra.mxu0 %v827_v13  ;;  %v217_v13 = vld [vmem:[#allocation2 + $0xa0] sm:$0xff] }
  0x1f   :  { %829 = vmatprep.subr.bf16.mxu0 %v975_v6  ;;  %v845_v15 = vpack.c.bf16 %v217_v13, %v216_v12 }
  0x21   :  { %846 = vmatpush3.bf16.msra.mxu1 %v845_v15 }
  0x22   :  { %831 = vmatpush3.bf16.msra.mxu0 %v830_v16  ;;  %v219_v16 = vld [vmem:[#allocation2 + $0xb0] sm:$0xff]  ;;  %847 = vmatprep.subr.bf16.mxu1 %v975_v6 }
  0x23   :  { %832 = vmatprep.subr.bf16.mxu0 %v975_v6  ;;  %v848_v17 = vpack.c.bf16 %v219_v16, %v218_v14  ;;  %v342_v16 = vld [vmem:[#allocation2 + $0x118] sm:$0xff] }
  0x25   :  { %849 = vmatpush3.bf16.msra.mxu1 %v848_v17  ;;  %v343_v17 = vld [vmem:[#allocation2 + $0x120] sm:$0xff] }
  0x26   :  { %834 = vmatpush3.bf16.msra.mxu0 %v833_v19  ;;  %v221_v19 = vld [vmem:[#allocation2 + $0xc0] sm:$0xff]  ;;  %850 = vmatprep.subr.bf16.mxu1 %v975_v6 }
  0x27   :  { %835 = vmatprep.subr.bf16.mxu0 %v975_v6  ;;  %v851_v20 = vpack.c.bf16 %v221_v19, %v220_v18  ;;  %v344_v18 = vld [vmem:[#allocation2 + $0x128] sm:$0xff]  ;;  %v869_v19 = vpack.c.bf16 %v343_v17, %v342_v16 }
  0x29   :  { %852 = vmatpush3.bf16.msra.mxu1 %v851_v20  ;;  %v345_v20 = vld [vmem:[#allocation2 + $0x130] sm:$0xff] }
  0x2a   :  { %837 = vmatpush3.bf16.msra.mxu0 %v836_v22  ;;  %v223_v22 = vld [vmem:[#allocation2 + $0xd0] sm:$0xff]  ;;  %853 = vmatprep.subr.bf16.mxu1 %v975_v6 }
  0x2b   :  { %838 = vmatprep.subr.bf16.mxu0 %v975_v6  ;;  %v854_v23 = vpack.c.bf16 %v223_v22, %v222_v21  ;;  %v872_v21 = vpack.c.bf16 %v345_v20, %v344_v18  ;;  %v346_v22 = vld [vmem:[#allocation2 + $0x138] sm:$0xff]  ;;  %v469_v20 = vld [vmem:[#allocation2 + $0x1a0] sm:$0xff] }
  0x2d   :  { %855 = vmatpush3.bf16.msra.mxu1 %v854_v23 }
  0x2e   :  { %840 = vmatpush3.bf16.msra.mxu0 %v839_v25  ;;  %v225_v25 = vld [vmem:[#allocation2 + $0xe0] sm:$0xff]  ;;  %856 = vmatprep.subr.bf16.mxu1 %v975_v6 }
  0x2f   :  { %841 = vmatprep.subr.bf16.mxu0 %v975_v6  ;;  %v857_v26 = vpack.c.bf16 %v225_v25, %v224_v24  ;;  %v348_v24 = vld [vmem:[#allocation2 + $0x148] sm:$0xff]  ;;  %v349_v25 = vld [vmem:[#allocation2 + $0x150] sm:$0xff] }
  0x31   :  { %858 = vmatpush3.bf16.msra.mxu1 %v857_v26  ;;  %v878_v26 = vpack.c.bf16 %v349_v25, %v348_v24  ;;  %v472_v24 = vld [vmem:[#allocation2 + $0x1b8] sm:$0xff]  ;;  %v473_v25 = vld [vmem:[#allocation2 + $0x1c0] sm:$0xff] }
  0x32   :  { %843 = vmatpush3.bf16.msra.mxu0 %v842_v28  ;;  %v227_v28 = vld [vmem:[#allocation2 + $0xf0] sm:$0xff]  ;;  %859 = vmatprep.subr.bf16.mxu1 %v975_v6 }
  0x33   :  { %868 = vmatprep.subr.bf16.mxu0 %v975_v6  ;;  %v860_v29 = vpack.c.bf16 %v227_v28, %v226_v27  ;;  %v351_v27 = vld [vmem:[#allocation2 + $0x160] sm:$0xff] }
  0x35   :  { %861 = vmatpush3.bf16.msra.mxu1 %v860_v29  ;;  %v352_v29 = vld [vmem:[#allocation2 + $0x168] sm:$0xff] }
  0x36   :  { %862 = vmatprep.subr.bf16.mxu1 %v975_v6 }
  0x93   :  { %v32_v34 = vpop.permute.xlu0 %31 }
  0x94   :  { %v38_v39 = vmul.f32 %v37_v35, %v32_v34  ;;  %v228_v34 = vld [vmem:[#allocation2 + $0xf8] sm:$0xff]  ;;  %v229_v35 = vld [vmem:[#allocation2 + $0x100] sm:$0xff] }
  0x98   :  { %v41_v38 = vpop.permute.xlu0 %40 }
  0x99   :  { %v47_v41 = vmul.f32 %v46_v36, %v41_v38  ;;  %v863_v36 = vpack.c.bf16 %v229_v35, %v228_v34  ;;  %v230_v38 = vld [vmem:[#allocation2 + $0x108] sm:$0xff]  ;;  %v353_v34 = vld [vmem:[#allocation2 + $0x170] sm:$0xff] }
  0x9a   :  { %v884_v35 = vpack.c.bf16 %v353_v34, %v352_v29  ;;  %v476_v29 = vld [vmem:[#allocation2 + $0x1d8] sm:$0xff]  ;;  %v477_v34 = vld [vmem:[#allocation2 + $0x1e0] sm:$0xff] }
  0x9b   :  { %v48_v42 = vadd.f32 %v47_v41, %v38_v39  ;;  %v231_v39 = vld [vmem:[#allocation2 + $0x110] sm:$0xff]  ;;  %864 = vmatpush3.bf16.msra.mxu1 %v863_v36  ;;  %v108_v41 = vsub.s32 5, %v1022_v30  ;;  %v354_v36 = vld [vmem:[#allocation2 + $0x178] sm:$0xff] }
  0x9c   :  { %865 = vmatprep.subr.bf16.mxu1 %v975_v6 }
  0x9d   :  { %v53_v43 = vadd.f32 %v52_v40, %v48_v42  ;;  %v866_v40 = vpack.c.bf16 %v231_v39, %v230_v38  ;;  %v109_v42 = vrot.slane %v1030_v33, %v108_v41  ;;  %v355_v38 = vld [vmem:[#allocation2 + $0x180] sm:$0xff] }
  0x9e   :  { %v887_v39 = vpack.c.bf16 %v355_v38, %v354_v36  ;;  %v478_v36 = vld [vmem:[#allocation2 + $0x1e8] sm:$0xff]  ;;  %v479_v38 = vld [vmem:[#allocation2 + $0x1f0] sm:$0xff] }
  0x9f   :  { %926 = vtanh.f32 %v53_v43  ;;  %867 = vmatpush3.bf16.msra.mxu1 %v866_v40  ;;  %v356_v40 = vld [vmem:[#allocation2 + $0x188] sm:$0xff] }
  0xa0   :  { %892 = vmatprep.subr.bf16.mxu1 %v975_v6 }
  0xa9   :  { %v927_v44 = vpop.eup %926 }
  0xaa   :  { %v55_v45 = vrot.slane %v927_v44, 4  ;;  %v61_v46 = vmul.f32 %v927_v44, %v927_v44 }
  0xac   :  { %v56_v47 = vadd.f32 %v927_v44, %v55_v45  ;;  %v62_v48 = vrot.slane %v61_v46, 4 }
  0xae   :  { %v57_v49 = vrot.slane %v56_v47, 2  ;;  %v63_v50 = vadd.f32 %v62_v48, %v61_v46 }
  0xb0   :  { %v58_v51 = vadd.f32 %v57_v49, %v56_v47  ;;  %v64_v52 = vrot.slane %v63_v50, 2 }
  0xb2   :  { %v59_v53 = vrot.slane %v58_v51, 1  ;;  %v65_v54 = vadd.f32 %v64_v52, %v63_v50 }
  0xb4   :  { %v60_v55 = vadd.f32 %v59_v53, %v58_v51  ;;  %v66_v56 = vrot.slane %v65_v54, 1 }
  0xb6   :  { %v67_v57 = vadd.f32 %v66_v56, %v65_v54  ;;  %v68_v58 = vmul.f32 0.125, %v60_v55 }
  0xb8   :  { %v69_v59 = vmul.f32 0.125, %v67_v57  ;;  %v70_v60 = vmul.f32 %v68_v58, %v68_v58 }
  0xba   :  { %v71_v61 = vsub.f32 %v69_v59, %v70_v60 }
  0xbc   :  { %v72_v62 = vadd.f32 1e-05, %v71_v61 }
  0xbe   :  { %928 = vrsqrt.f32 %v72_v62 }
  0xc8   :  { %v929_v63 = vpop.eup %928 }
  0xc9   :  { %v74_v0 = vmul.f32 %v929_v63, %v1030_v33 }
  0xcb   :  { %v75_v2 = vmul.f32 %v74_v0, %v68_v58  ;;  %v83_v4 = vrot.slane %v74_v0, %v82_v1 }
  0xcd   :  { %v77_v3 = vrot.slane %v75_v2, 7  ;;  %v84_v8 = vmul.f32 %v927_v44, %v83_v4  ;;  %v208_v4 = vsub.s32 6, %v1022_v30 }
  0xcf   :  { %v79_v7 = vsub.f32 %v1030_v33, %v77_v3 }
  0xd1   :  { %v88_v10 = vrot.slane %v79_v7, %v87_v5 }
  0xd3   :  { %v89_v11 = vadd.f32 %v88_v10, %v84_v8 }
  0xd5   :  { %713 = vmatmul.mubr.f32.vlgmr.msra.gmra.mrb[0].mxu0 %v89_v11  ;;  %v213_v11 = vsub.s32 7, %v1022_v30 }
  0xd6   :  { %782 = vmatprep.mubr.msk.f32.mxu0 %vm976_vm0, %v977_v9  ;;  %870 = vmatpush3.bf16.msra.mxu0 %v869_v19  ;;  %v468_v19 = vld [vmem:[#allocation2 + $0x198] sm:$0xff] }
  0xd7   :  { %871 = vmatprep.subr.bf16.mxu0 %v975_v6 }
  0xda   :  { %873 = vmatpush3.bf16.msra.mxu0 %v872_v21  ;;  %v470_v21 = vld [vmem:[#allocation2 + $0x1a8] sm:$0xff] }
  0xdb   :  { %874 = vmatprep.subr.bf16.mxu0 %v975_v6 }
 0x1a8   :  { %v176_v43 = vpop.f32.mrb[0].mxu0 }
 0x1a9   :  { %v177_v44 = vadd.f32 %v176_v43, %v109_v42  ;;  %v714_v45 = vpop.f32.mrb[1].mxu0  ;;  %v357_v42 = vld [vmem:[#allocation2 + $0x190] sm:$0xff] }
 0x1aa   :  { %v890_v43 = vpack.c.bf16 %v357_v42, %v356_v40  ;;  %v480_v40 = vld [vmem:[#allocation2 + $0x1f8] sm:$0xff]  ;;  %v481_v42 = vld [vmem:[#allocation2 + $0x200] sm:$0xff] }
 0x1ab   :  { %930 = vtanh.f32 %v177_v44  ;;  %v1080_v44 = vld [vmem:[#allocation2 + $0x8] sm:$0xff] }
 0x1ac   :  { %v235_v45 = vrot.slane %v1080_v44, %v1025_v31 }
 0x1b5   :  { %v931_v46 = vpop.eup %930 }
 0x1b6   :  { %v181_v47 = vrot.slane %v931_v46, 4  ;;  %v187_v48 = vmul.f32 %v931_v46, %v931_v46 }
 0x1b8   :  { %v182_v49 = vadd.f32 %v931_v46, %v181_v47  ;;  %v188_v50 = vrot.slane %v187_v48, 4 }
 0x1ba   :  { %v183_v51 = vrot.slane %v182_v49, 2  ;;  %v189_v52 = vadd.f32 %v188_v50, %v187_v48 }
 0x1bc   :  { %v184_v53 = vadd.f32 %v183_v51, %v182_v49  ;;  %v190_v54 = vrot.slane %v189_v52, 2 }
 0x1be   :  { %v185_v55 = vrot.slane %v184_v53, 1  ;;  %v191_v56 = vadd.f32 %v190_v54, %v189_v52 }
 0x1c0   :  { %v186_v57 = vadd.f32 %v185_v55, %v184_v53  ;;  %v192_v58 = vrot.slane %v191_v56, 1 }
 0x1c2   :  { %v193_v59 = vadd.f32 %v192_v58, %v191_v56  ;;  %v194_v60 = vmul.f32 0.125, %v186_v57 }
 0x1c4   :  { %v195_v61 = vmul.f32 0.125, %v193_v59  ;;  %v196_v62 = vmul.f32 %v194_v60, %v194_v60 }
 0x1c6   :  { %v197_v63 = vsub.f32 %v195_v61, %v196_v62 }
 0x1c8   :  { %v198_v0 = vadd.f32 1e-05, %v197_v63 }
 0x1ca   :  { %932 = vrsqrt.f32 %v198_v0 }
 0x1d4   :  { %v933_v2 = vpop.eup %932 }
 0x1d5   :  { %v200_v3 = vmul.f32 %v933_v2, %v1030_v33 }
 0x1d7   :  { %v201_v7 = vmul.f32 %v200_v3, %v194_v60  ;;  %v209_v10 = vrot.slane %v200_v3, %v208_v4 }
 0x1d9   :  { %v203_v8 = vrot.slane %v201_v7, 7  ;;  %v210_v13 = vmul.f32 %v931_v46, %v209_v10 }
 0x1db   :  { %v205_v12 = vsub.f32 %v1030_v33, %v203_v8  ;;  %v347_v33 = vld [vmem:[#allocation2 + $0x140] sm:$0xff] }
 0x1dc   :  { %v875_v23 = vpack.c.bf16 %v347_v33, %v346_v22  ;;  %v893_v22 = vpack.c.bf16 %v469_v20, %v468_v19  ;;  %v471_v33 = vld [vmem:[#allocation2 + $0x1b0] sm:$0xff]  ;;  %v487_v20 = vrot.slane %v1080_v44, %v208_v4 }
 0x1dd   :  { %v214_v14 = vrot.slane %v205_v12, %v213_v11 }
 0x1de   :  { %876 = vmatpush3.bf16.msra.mxu0 %v875_v23  ;;  %v896_v23 = vpack.c.bf16 %v471_v33, %v470_v21 }
 0x1df   :  { %v215_v15 = vadd.f32 %v214_v14, %v210_v13  ;;  %877 = vmatprep.subr.bf16.mxu0 %v975_v6 }
 0x1e1   :  { %748 = vmatmul.mubr.f32.vlgmr.msra.gmra.mrb[0].mxu1 %v215_v15 }
 0x1e2   :  { %817 = vmatprep.mubr.msk.f32.mxu1 %vm976_vm0, %v977_v9  ;;  %v350_v9 = vld [vmem:[#allocation2 + $0x158] sm:$0xff]  ;;  %879 = vmatpush3.bf16.msra.mxu0 %v878_v26  ;;  %v899_v26 = vpack.c.bf16 %v473_v25, %v472_v24 }
 0x1e3   :  { %v881_v28 = vpack.c.bf16 %v351_v27, %v350_v9  ;;  %880 = vmatprep.subr.bf16.mxu0 %v975_v6  ;;  %894 = vmatpush3.bf16.msra.mxu1 %v893_v22  ;;  %v474_v9 = vld [vmem:[#allocation2 + $0x1c8] sm:$0xff]  ;;  %v475_v27 = vld [vmem:[#allocation2 + $0x1d0] sm:$0xff] }
 0x1e4   :  { %895 = vmatprep.subr.bf16.mxu1 %v975_v6 }
 0x1e6   :  { %882 = vmatpush3.bf16.msra.mxu0 %v881_v28  ;;  %v902_v28 = vpack.c.bf16 %v475_v27, %v474_v9 }
 0x1e7   :  { %883 = vmatprep.subr.bf16.mxu0 %v975_v6  ;;  %897 = vmatpush3.bf16.msra.mxu1 %v896_v23 }
 0x1e8   :  { %898 = vmatprep.subr.bf16.mxu1 %v975_v6 }
 0x1ea   :  { %885 = vmatpush3.bf16.msra.mxu0 %v884_v35  ;;  %v905_v35 = vpack.c.bf16 %v477_v34, %v476_v29 }
 0x1eb   :  { %886 = vmatprep.subr.bf16.mxu0 %v975_v6  ;;  %900 = vmatpush3.bf16.msra.mxu1 %v899_v26 }
 0x1ec   :  { %901 = vmatprep.subr.bf16.mxu1 %v975_v6 }
 0x1ee   :  { %888 = vmatpush3.bf16.msra.mxu0 %v887_v39  ;;  %v908_v39 = vpack.c.bf16 %v479_v38, %v478_v36 }
 0x1ef   :  { %889 = vmatprep.subr.bf16.mxu0 %v975_v6  ;;  %903 = vmatpush3.bf16.msra.mxu1 %v902_v28 }
 0x1f0   :  { %904 = vmatprep.subr.bf16.mxu1 %v975_v6 }
 0x1f2   :  { %891 = vmatpush3.bf16.msra.mxu0 %v890_v43  ;;  %v911_v43 = vpack.c.bf16 %v481_v42, %v480_v40 }
 0x1f3   :  { %906 = vmatpush3.bf16.msra.mxu1 %v905_v35 }
 0x1f4   :  { %907 = vmatprep.subr.bf16.mxu1 %v975_v6 }
 0x1f7   :  { %909 = vmatpush3.bf16.msra.mxu1 %v908_v39 }
 0x1f8   :  { %910 = vmatprep.subr.bf16.mxu1 %v975_v6 }
 0x1fb   :  { %912 = vmatpush3.bf16.msra.mxu1 %v911_v43 }
 0x1fc   :  { %913 = vmatprep.subr.bf16.mxu1 %v975_v6 }
 0x2b4   :  { %v302_v46 = vpop.f32.mrb[0].mxu1 }
 0x2b5   :  { %v303_v47 = vadd.f32 %v302_v46, %v235_v45  ;;  %v749_v48 = vpop.f32.mrb[1].mxu1  ;;  %v482_v45 = vld [vmem:[#allocation2 + $0x208] sm:$0xff]  ;;  %v483_v46 = vld [vmem:[#allocation2 + $0x210] sm:$0xff] }
 0x2b6   :  { %v361_v48 = vrot.slane %v1080_v44, %v82_v1 }
 0x2b7   :  { %934 = vtanh.f32 %v303_v47  ;;  %v914_v47 = vpack.c.bf16 %v483_v46, %v482_v45 }
 0x2b9   :  { %915 = vmatpush3.bf16.msra.mxu1 %v914_v47 }
 0x2c1   :  { %v935_v49 = vpop.eup %934 }
 0x2c2   :  { %v307_v50 = vrot.slane %v935_v49, 4  ;;  %v313_v51 = vmul.f32 %v935_v49, %v935_v49 }
 0x2c4   :  { %v308_v52 = vadd.f32 %v935_v49, %v307_v50  ;;  %v314_v53 = vrot.slane %v313_v51, 4 }
 0x2c6   :  { %v309_v54 = vrot.slane %v308_v52, 2  ;;  %v315_v55 = vadd.f32 %v314_v53, %v313_v51 }
 0x2c8   :  { %v310_v56 = vadd.f32 %v309_v54, %v308_v52  ;;  %v316_v57 = vrot.slane %v315_v55, 2 }
 0x2ca   :  { %v311_v58 = vrot.slane %v310_v56, 1  ;;  %v317_v59 = vadd.f32 %v316_v57, %v315_v55 }
 0x2cc   :  { %v312_v60 = vadd.f32 %v311_v58, %v310_v56  ;;  %v318_v61 = vrot.slane %v317_v59, 1 }
 0x2ce   :  { %v319_v62 = vadd.f32 %v318_v61, %v317_v59  ;;  %v320_v63 = vmul.f32 0.125, %v312_v60 }
 0x2d0   :  { %v321_v0 = vmul.f32 0.125, %v319_v62  ;;  %v322_v2 = vmul.f32 %v320_v63, %v320_v63 }
 0x2d2   :  { %v323_v3 = vsub.f32 %v321_v0, %v322_v2 }
 0x2d4   :  { %v324_v7 = vadd.f32 1e-05, %v323_v3 }
 0x2d6   :  { %936 = vrsqrt.f32 %v324_v7 }
 0x2e0   :  { %v937_v8 = vpop.eup %936 }
 0x2e1   :  { %v326_v10 = vmul.f32 %v937_v8, %v1080_v44 }
 0x2e3   :  { %v327_v12 = vmul.f32 %v326_v10, %v320_v63  ;;  %v335_v14 = vrot.slane %v326_v10, %v1028_v32 }
 0x2e5   :  { %v329_v13 = vrot.slane %v327_v12, 7  ;;  %v336_v16 = vmul.f32 %v935_v49, %v335_v14 }
 0x2e7   :  { %v331_v15 = vsub.f32 %v1080_v44, %v329_v13 }
 0x2e9   :  { %v340_v17 = vrot.slane %v331_v15, %v1037_v37 }
 0x2eb   :  { %v341_v18 = vadd.f32 %v340_v17, %v336_v16 }
 0x2ed   :  { %783 = vmatmul.mubr.f32.vlgmr.msra.gmra.mrb[2].mxu0 %v341_v18 }
 0x3c0   :  { %v428_v49 = vpop.f32.mrb[2].mxu0 }
 0x3c1   :  { %v429_v50 = vadd.f32 %v428_v49, %v361_v48  ;;  %v784_v51 = vpop.f32.mrb[3].mxu0  ;;  %v28_v48 = vld [vmem:[#allocation2 + $0x10] sm:$0xff] }
 0x3c3   :  { %938 = vtanh.f32 %v429_v50 }
 0x3cd   :  { %v939_v52 = vpop.eup %938 }
 0x3ce   :  { %v433_v53 = vrot.slane %v939_v52, 4  ;;  %v439_v54 = vmul.f32 %v939_v52, %v939_v52 }
 0x3d0   :  { %v434_v55 = vadd.f32 %v939_v52, %v433_v53  ;;  %v440_v56 = vrot.slane %v439_v54, 4 }
 0x3d2   :  { %v435_v57 = vrot.slane %v434_v55, 2  ;;  %v441_v58 = vadd.f32 %v440_v56, %v439_v54  ;;  %v597_v54 = vrot.slane %v28_v48, %v1028_v32 }
 0x3d4   :  { %v436_v59 = vadd.f32 %v435_v57, %v434_v55  ;;  %v442_v60 = vrot.slane %v441_v58, 2  ;;  %v604_v57 = vrot.slane %v28_v48, %v1037_v37 }
 0x3d6   :  { %v437_v61 = vrot.slane %v436_v59, 1  ;;  %v443_v6 = vadd.f32 %v442_v60, %v441_v58 }
 0x3d8   :  { %v438_v62 = vadd.f32 %v437_v61, %v436_v59  ;;  %v444_v63 = vrot.slane %v443_v6, 1 }
 0x3da   :  { %v445_v0 = vadd.f32 %v444_v63, %v443_v6  ;;  %v446_v2 = vmul.f32 0.125, %v438_v62 }
 0x3dc   :  { %v447_v1 = vmul.f32 0.125, %v445_v0  ;;  %v448_v3 = vmul.f32 %v446_v2, %v446_v2 }
 0x3de   :  { %v449_v7 = vsub.f32 %v447_v1, %v448_v3 }
 0x3e0   :  { %v450_v8 = vadd.f32 1e-05, %v449_v7 }
 0x3e2   :  { %940 = vrsqrt.f32 %v450_v8 }
 0x3ec   :  { %v941_v10 = vpop.eup %940 }
 0x3ed   :  { %v452_v12 = vmul.f32 %v941_v10, %v1080_v44 }
 0x3ef   :  { %v453_v13 = vmul.f32 %v452_v12, %v446_v2  ;;  %v461_v15 = vrot.slane %v452_v12, %v87_v5 }
 0x3f1   :  { %v455_v14 = vrot.slane %v453_v13, 7  ;;  %v462_v17 = vmul.f32 %v939_v52, %v461_v15 }
 0x3f3   :  { %v457_v16 = vsub.f32 %v1080_v44, %v455_v14 }
 0x3f5   :  { %v466_v18 = vrot.slane %v457_v16, %v108_v41 }
 0x3f7   :  { %v467_v19 = vadd.f32 %v466_v18, %v462_v17 }
 0x3f9   :  { %818 = vmatmul.mubr.f32.vlgmr.msra.gmra.mrb[2].mxu1 %v467_v19 }
 0x4cc   :  { %v554_v21 = vpop.f32.mrb[2].mxu1 }
 0x4cd   :  { %v555_v22 = vadd.f32 %v554_v21, %v487_v20  ;;  %v819_v33 = vpop.f32.mrb[3].mxu1 }
 0x4cf   :  { %942 = vtanh.f32 %v555_v22 }
 0x4d9   :  { %v943_v23 = vpop.eup %942 }
 0x4da   :  { %v559_v24 = vrot.slane %v943_v23, 4  ;;  %v565_v25 = vmul.f32 %v943_v23, %v943_v23 }
 0x4dc   :  { %v560_v5 = vadd.f32 %v943_v23, %v559_v24  ;;  %v566_v26 = vrot.slane %v565_v25, 4 }
 0x4de   :  { %v561_v9 = vrot.slane %v560_v5, 2  ;;  %v567_v27 = vadd.f32 %v566_v26, %v565_v25 }
 0x4e0   :  { %v562_v28 = vadd.f32 %v561_v9, %v560_v5  ;;  %v568_v29 = vrot.slane %v567_v27, 2 }
 0x4e2   :  { %v563_v41 = vrot.slane %v562_v28, 1  ;;  %v569_v34 = vadd.f32 %v568_v29, %v567_v27 }
 0x4e4   :  { %v564_v35 = vadd.f32 %v563_v41, %v562_v28  ;;  %v570_v36 = vrot.slane %v569_v34, 1 }
 0x4e6   :  { %v571_v38 = vadd.f32 %v570_v36, %v569_v34  ;;  %v572_v39 = vmul.f32 0.125, %v564_v35 }
 0x4e8   :  { %v573_v4 = vmul.f32 0.125, %v571_v38  ;;  %v574_v40 = vmul.f32 %v572_v39, %v572_v39 }
 0x4ea   :  { %v575_v42 = vsub.f32 %v573_v4, %v574_v40 }
 0x4ec   :  { %v576_v43 = vadd.f32 1e-05, %v575_v42 }
 0x4ee   :  { %944 = vrsqrt.f32 %v576_v43 }
 0x4f8   :  { %v945_v45 = vpop.eup %944 }
 0x4f9   :  { %v578_v46 = vmul.f32 %v945_v45, %v1080_v44 }
 0x4fb   :  { %v579_v47 = vmul.f32 %v578_v46, %v572_v39  ;;  %v587_v50 = vrot.slane %v578_v46, %v213_v11 }
 0x4fd   :  { %v581_v49 = vrot.slane %v579_v47, 7  ;;  %v588_v52 = vmul.f32 %v943_v23, %v587_v50 }
 0x4ff   :  { %v583_v51 = vsub.f32 %v28_v48, %v581_v49 }
 0x501   :  { %v592_v53 = vrot.slane %v583_v51, %v1025_v31 }
 0x503   :  { %v593_v55 = vadd.f32 %v592_v53, %v588_v52 }
 0x505   :  { %v598_v56 = vmul.f32 %v597_v54, %v593_v55 }
 0x507   :  { %599 = vadd.xlane.f32.xlu1 %v598_v56 }
 0x594   :  { %v600_v58 = vpop.xlane.xlu1 %599 }
 0x595   :  { %v605_v59 = vadd.f32 %v604_v57, %v600_v58 }
 0x597   :  { %606 = vst [vmem:[%s1118_s2] sm:$0xff] %v605_v59 }
 0x598   :  { %611 = vsyncpa [#allocation3], 1 }

</bundles_post_ra>
